<compile_context>
chip_gen: v7x
topology: tpu7x:2x2x1
jax: 0.10.0
libtpu: 0.0.40
codegen_flags: <defaults>
</compile_context>

<pallas_src>
import functools

import jax
import jax.numpy as jnp
from jax.experimental import pallas as pl
from jax.experimental.pallas import tpu as pltpu


# Safe scoped-VMEM limit on every generation (v5e default 16 MiB -> raise to
# 32 MiB; v6e defaults to 32 MiB; v7x physical is 64 MiB so 32 MiB scoped with
# ~24 MiB of double-buffered tiles leaves headroom for compiler scratch).
_VMEM_LIMIT_BYTES = 32 * 1024 * 1024
_TILE_BUDGET_BYTES = 24 * 1024 * 1024
_TC_CAP = 512  # max channel-block width (lanes); multiple of 128


def _add_readout_kernel(x_ref, o_ref, *, start_index, n_out):
    # x_ref: (tb, N, tc) block, o_ref: (tb, n_out, tc) block.
    # Read the sublane-offset token slice and the readout row(s) straight from
    # the ref so the loads fuse with the add (no full-tile intermediate copy).
    tokens = x_ref[:, pl.ds(start_index, n_out), :]
    if start_index == 2:
        readout = (x_ref[:, 0:1, :] + x_ref[:, 1:2, :]) * 0.5   # (tb, 1, tc)
    else:
        readout = x_ref[:, 0:1, :]                              # (tb, 1, tc)
    o_ref[...] = tokens + readout


def _round_up(v, m):
    return -(-v // m) * m


def _choose_blocks(B, N, n_out, C, dtype):
    """Pick (tb, tc): channel block is a lane-dense divisor of C (<= _TC_CAP);
    batch block is the largest count whose double-buffered in+out tiles (with
    sublane padding folded in) fit the VMEM budget.  Ragged last batch block
    is allowed via cdiv, so tb does not need to divide B."""
    itemsize = jnp.dtype(dtype).itemsize
    sublane = max(8, 32 // itemsize)          # 8 (f32) / 16 (bf16) / 32 (int8)
    n_pad = _round_up(N, sublane)
    no_pad = _round_up(max(n_out, 1), sublane)

    if C % 128 == 0 and C > _TC_CAP:
        tc = 128
        for cand in range(256, _TC_CAP + 1, 128):
            if C % cand == 0:
                tc = cand
    else:
        tc = C                                 # full-extent lane block

    per_batch = 2 * (n_pad + no_pad) * tc * itemsize   # x2: double-buffered
    tb = int(max(1, min(B, _TILE_BUDGET_BYTES // per_batch)))
    return tb, tc


def add_readout(x, start_index=1, *, tb=None, tc=None):
    """Pallas implementation of AddReadout.forward.  x: (B, N, C)."""
    if start_index not in (1, 2):
        raise ValueError(f"start_index must be 1 or 2, got {start_index}")
    B, N, C = x.shape
    n_out = N - start_index
    auto_tb, auto_tc = _choose_blocks(B, N, n_out, C, x.dtype)
    tb = auto_tb if tb is None else int(tb)
    tc = auto_tc if tc is None else int(tc)
    if C % tc != 0 or (tc != C and tc % 128 != 0):
        raise ValueError(f"tc={tc} must divide C={C} and be lane-dense")

    grid = (pl.cdiv(B, tb), C // tc)
    kernel = functools.partial(_add_readout_kernel,
                               start_index=start_index, n_out=n_out)
    # TODO(synk): in the full DPT readout path this add should be fused into the
    # neighbouring projection/unflatten kernel's epilogue to save one full HBM
    # round trip — that dwarfs any intra-kernel tuning of this standalone op.
    return pl.pallas_call(
        kernel,
        out_shape=jax.ShapeDtypeStruct((B, n_out, C), x.dtype),
        grid=grid,
        in_specs=[pl.BlockSpec((tb, N, tc), lambda b, c: (b, 0, c))],
        out_specs=pl.BlockSpec((tb, n_out, tc), lambda b, c: (b, 0, c)),
        compiler_params=pltpu.CompilerParams(
            dimension_semantics=("parallel", "parallel"),
            vmem_limit_bytes=_VMEM_LIMIT_BYTES),
    )(x)


def add_readout_ref(x, start_index=1):
    if start_index == 2:
        readout = (x[:, 0] + x[:, 1]) / 2
    else:
        readout = x[:, 0]
    return x[:, start_index:] + readout[:, None, :]


if __name__ == "__main__":
    key = jax.random.PRNGKey(0)

    # start_index = 1: 16 patch tokens + 1 readout token, hidden = 128 (f32).
    B, N, C = 4, 17, 128
    x = jax.random.normal(key, (B, N, C), dtype=jnp.float32)
    out = jax.block_until_ready(add_readout(x, start_index=1))
    ref = add_readout_ref(x, start_index=1)
    assert out.shape == (B, N - 1, C), out.shape
    assert jnp.allclose(out, ref, atol=1e-6, rtol=1e-6), "mismatch (start_index=1)"

    # start_index = 2: 16 patch tokens + 2 readout tokens (f32).
    B2, N2, C2 = 4, 18, 128
    x2 = jax.random.normal(jax.random.PRNGKey(1), (B2, N2, C2), dtype=jnp.float32)
    out2 = jax.block_until_ready(add_readout(x2, start_index=2))
    ref2 = add_readout_ref(x2, start_index=2)
    assert out2.shape == (B2, N2 - 2, C2), out2.shape
    assert jnp.allclose(out2, ref2, atol=1e-6, rtol=1e-6), "mismatch (start_index=2)"

    # Exercise the ragged batch grid (cdiv) + channel-blocked grid in bf16.
    B3, N3, C3 = 3, 9, 256
    x3 = jax.random.normal(jax.random.PRNGKey(2), (B3, N3, C3), dtype=jnp.bfloat16)
    out3 = jax.block_until_ready(add_readout(x3, start_index=1, tb=2, tc=128))
    ref3 = add_readout_ref(x3, start_index=1)
    assert out3.shape == (B3, N3 - 1, C3), out3.shape
    assert jnp.allclose(out3.astype(jnp.float32), ref3.astype(jnp.float32),
                        atol=2e-2, rtol=2e-2), "mismatch (ragged/bf16)"

    print("KERNEL_OK")
</pallas_src>

<mosaic_0001>
module attributes {stable_mosaic.version = 11 : i64} {
  func.func @_add_readout_kernel(%arg0: i32, %arg1: i32, %arg2: memref<4x17x128xf32, #tpu.memory_space<vmem>>, %arg3: memref<4x16x128xf32, #tpu.memory_space<vmem>>) attributes {dimension_semantics = [#tpu.dimension_semantics<parallel>, #tpu.dimension_semantics<parallel>], iteration_bounds = array<i64: 1, 1>, scalar_prefetch = 0 : i64, scratch_operands = 0 : i64, tpu.core_type = #tpu.core_type<tc>, window_params = [{transform_indices = @transform_0, window_bounds = array<i64: 4, 17, 128>}, {transform_indices = @transform_1, window_bounds = array<i64: 4, 16, 128>}]} {
    %c0 = arith.constant 0 : index
    %c1 = arith.constant 1 : index
    %c0_0 = arith.constant 0 : index
    %0 = vector.load %arg2[%c0, %c1, %c0_0] : memref<4x17x128xf32, #tpu.memory_space<vmem>>, vector<4x16x128xf32>
    %c0_1 = arith.constant 0 : index
    %c0_2 = arith.constant 0 : index
    %c0_3 = arith.constant 0 : index
    %1 = vector.load %arg2[%c0_1, %c0_2, %c0_3] : memref<4x17x128xf32, #tpu.memory_space<vmem>>, vector<4x1x128xf32>
    %2 = vector.broadcast %1 : vector<4x1x128xf32> to vector<4x16x128xf32>
    %3 = arith.addf %0, %2 : vector<4x16x128xf32>
    %c0_4 = arith.constant 0 : index
    %c0_5 = arith.constant 0 : index
    %c0_6 = arith.constant 0 : index
    %4 = vector.load %arg3[%c0_4, %c0_5, %c0_6] : memref<4x16x128xf32, #tpu.memory_space<vmem>>, vector<4x16x128xf32>
    tpu.vector_store %arg3[%c0_4, %c0_5, %c0_6], %3 {strides = array<i32>} : memref<4x16x128xf32, #tpu.memory_space<vmem>>, vector<4x16x128xf32>,
    return
  }
  func.func @transform_0(%arg0: i32, %arg1: i32) -> (i32, i32, i32) {
    %c0_i32 = arith.constant 0 : i32
    %c0_i32_0 = arith.constant 0 : i32
    return %arg0, %c0_i32, %arg1 : i32, i32, i32
  }
  func.func @transform_1(%arg0: i32, %arg1: i32) -> (i32, i32, i32) {
    %c0_i32 = arith.constant 0 : i32
    %c0_i32_0 = arith.constant 0 : i32
    return %arg0, %c0_i32, %arg1 : i32, i32, i32
  }
}

</mosaic_0001>

<bundles_post_ra>
// kernel: tpu_custom_call.1
= control target key start
LH: loop header
LB: loop body
LE: loop exit
PB: predicated region body
PF: predicated region fallthrough
CT: control target
= control target key end

     0   :  { %s100_s18 = smov [#allocation2]   ;;  %s161_s0 = inlined_call_operand.vmem [shape: f32[4,17,128], index: 0, kind: input, shape index: {}]   ;;  %s162_s1 = inlined_call_operand.hbm [shape: f32[4,16,128], index: 1, kind: output, shape index: {}]  }
   0x1   :  { %v9_v0 = vld [vmem:[%s161_s0 + $0x1] sm:$0xff]  ;;  %v69_v1 = vld [vmem:[%s161_s0] ss:$0 sm:$0xff]  ;;  %v10_v2 = vld [vmem:[%s161_s0 + $0x9] sm:$0xff]  ;;  %s58_s19 = sshll.u32 %s100_s18, 4  ;;  %s59_s19 = int_to_ptr.vmem [resolvable:$true] %s58_s19 }
   0x2   :  { %v37_v3 = vadd.f32 %v69_v1, %v9_v0  ;;  %v38_v4 = vadd.f32 %v69_v1, %v10_v2  ;;  %v11_v5 = vld [vmem:[%s161_s0 + $0x19] sm:$0xff]  ;;  %v70_v6 = vld [vmem:[%s161_s0 + $0x18] ss:$0 sm:$0xff]  ;;  %v12_v7 = vld [vmem:[%s161_s0 + $0x21] sm:$0xff] }
   0x3   :  { %v39_v8 = vadd.f32 %v70_v6, %v11_v5  ;;  %v40_v9 = vadd.f32 %v70_v6, %v12_v7  ;;  %v13_v10 = vld [vmem:[%s161_s0 + $0x31] sm:$0xff]  ;;  %v71_v11 = vld [vmem:[%s161_s0 + $0x30] ss:$0 sm:$0xff]  ;;  %v14_v12 = vld [vmem:[%s161_s0 + $0x39] sm:$0xff] }
   0x4   :  { %45 = vst [vmem:[#allocation2] sm:$0xff] %v37_v3  ;;  %46 = vst [vmem:[#allocation2 + $0x8] sm:$0xff] %v38_v4  ;;  %v41_v13 = vadd.f32 %v71_v11, %v13_v10  ;;  %v42_v14 = vadd.f32 %v71_v11, %v14_v12  ;;  %v15_v15 = vld [vmem:[%s161_s0 + $0x49] sm:$0xff]  ;;  %v72_v16 = vld [vmem:[%s161_s0 + $0x48] ss:$0 sm:$0xff] }
   0x5   :  { %v16_v17 = vld [vmem:[%s161_s0 + $0x51] sm:$0xff]  ;;  %47 = vst [vmem:[#allocation2 + $0x10] sm:$0xff] %v39_v8  ;;  %48 = vst [vmem:[#allocation2 + $0x18] sm:$0xff] %v40_v9  ;;  %v43_v18 = vadd.f32 %v72_v16, %v15_v15 }
   0x6   :  { %v44_v19 = vadd.f32 %v72_v16, %v16_v17 }
   0x7   :  { %6 = vsyncpa [#allocation3], 0  ;;  %49 = vst [vmem:[#allocation2 + $0x20] sm:$0xff] %v41_v13  ;;  %s76_s3 = scalar_lea.vmem %s59_s19, 1024  ;;  %p81_p1 = scmp.lt.s32.totalorder %s59_s19, %s59_s19 }
   0x8   :  { %50 = vst [vmem:[#allocation2 + $0x28] sm:$0xff] %v42_v14  ;;  %51 = vst [vmem:[#allocation2 + $0x30] sm:$0xff] %v43_v18  ;;  %p77_p0 = scmp.ne.s32.totalorder %s59_s19, %s76_s3  ;;  %p82_p2 = scmp.lt.s32.totalorder %s76_s3, %s76_s3 }
   0x9   :  { %52 = vst [vmem:[#allocation2 + $0x38] sm:$0xff] %v44_v19 }
   0xa   :  { %p83_p3 = por %p82_p2, %p81_p1 }
   0xc   :  { %p84_p4 = pnand %p83_p3, %p77_p0 }
   0xe   :  { %87 = shalt.err (!%p84_p4)
}
   0xf   :  { %s88_s0 = scalar_lea.hbm %s162_s1, 1024 }
  0x10   :  { %p89_p5 = scmp.ne.s32.totalorder %s162_s1, %s88_s0  ;;  %p92_p6 = scmp.lt.u32.totalorder %s88_s0, %s162_s1 }
  0x12   :  { %p94_p7 = pnand %p92_p6, %p89_p5 }
  0x14   :  { %97 = shalt.err (!%p94_p7)
}
  0x15   :  { %s101_s10 = smov 128   ;;  %s102_s11 = smov 8  }
  0x16   :  { %64 = dma.vmem_to_hbm [thread:$0]  %s59_s19, 1024, %s162_s1, [#allocation3], %s101_s10, %s101_s10, %s102_s11  }
  0x17   :  { %98 = dma.done.wait [#allocation3], 1024  }
  0x18   :  { %99 = vsyncadd [#allocation3], 4294966272 }
  0x19   :  { %68 = vsyncpa [#allocation3], 1 }

</bundles_post_ra>
